<compile_context>
chip_gen: v5e
topology: v5e:2x2
jax: 0.10.0
libtpu: 0.0.40
codegen_flags: <defaults>
</compile_context>

<pallas_src>
import functools

import numpy as np
import jax
import jax.numpy as jnp
from jax.experimental import pallas as pl
from jax.experimental.pallas import tpu as pltpu


def ride_loss_kernel(expert_ref, out_logits_ref, tgt_ref, m_ref, out_ref, p_ref, *,
                     base_loss_factor, additional_diversity_factor,
                     diversity_temperature, n_total, num_experts):
    e = pl.program_id(1)
    T = diversity_temperature
    unit_t = (T == 1.0)                 # static: skip the /T passes when T == 1
    inv_t = 1.0 / T
    div_scale = additional_diversity_factor * T * T / n_total

    # ---- expert-invariant ensemble softmax: once per batch tile (e == 0) ----
    @pl.when(e == 0)
    def _():
        o = out_logits_ref[...].astype(jnp.float32)
        if not unit_t:
            o = o * inv_t
        mo = jnp.max(o, axis=-1, keepdims=True)
        z = o - mo
        ez = jnp.exp(z)
        se = jnp.sum(ez, axis=-1, keepdims=True)
        p = ez / se                              # softmax(output_logits / T)
        p_ref[...] = p
        plogp = jnp.sum(p * (z - jnp.log(se)))   # sum over tile of p * log p
        # This constant appears once per expert in the KL term; fold all E copies
        # into the accumulator up front.
        out_ref[...] = jnp.full(out_ref.shape, div_scale * num_experts * plogp,
                                dtype=out_ref.dtype)

    x = expert_ref[0].astype(jnp.float32)        # (TN, C) logits of expert e
    tn, C = x.shape

    # ---- LDAM margin at the target class: final = x - s*m[target] at target col ----
    t = tgt_ref[...]                             # (TN, 1) int32 class indices
    cols = jax.lax.broadcasted_iota(jnp.int32, (tn, C), 1)
    mask = cols == t                             # one-hot mask, built in-kernel
    sm = m_ref[...]                              # (1, C) = s * m_list
    final = jnp.where(mask, x - sm, x)

    # ---- MultiLabelSoftMarginLoss element term ('mean' reduction, no weights) ----
    # y*logsig(z) + (1-y)*logsig(-z) == logsig(z) - (1-y)*z   (single EUP pass)
    # NOTE: jnp.log1p keeps the EUP cost at one log; swap for jnp.log(1+t) only if
    # the Mosaic dump shows it expanding to more than one transcendental.
    ls = jnp.minimum(final, 0.0) - jnp.log1p(jnp.exp(-jnp.abs(final)))
    base_elem = ls - jnp.where(mask, 0.0, final)          # (TN, C)

    # ---- diversity KL ('batchmean'), expanded; log_q never materialized ----
    # sum p*(log p - log q) = sum(p*log p) - sum(p*x/T) + sum_n lse(x_n/T)
    xt = x if unit_t else x * inv_t
    mx = jnp.max(xt, axis=-1, keepdims=True)
    lse = mx + jnp.log(jnp.sum(jnp.exp(xt - mx), axis=-1, keepdims=True))  # (TN, 1)

    p = p_ref[...]
    base_coef = -base_loss_factor / (float(C) * n_total)
    # Single fused (TN,C) contribution -> one lane reduce -> one small final reduce.
    contrib = base_coef * base_elem - div_scale * (p * xt)
    row = jnp.sum(contrib, axis=-1, keepdims=True) + div_scale * lse       # (TN, 1)
    out_ref[...] = out_ref[...] + jnp.sum(row)


def _vmem_plan():
    """(vmem_limit_bytes, tiling_budget_bytes) per TPU generation."""
    cap = None
    try:
        cap = int(pltpu.get_tpu_info().vmem_capacity_bytes)
    except Exception:
        cap = None
    if cap is None or cap <= 64 * 1024 * 1024:
        # v7x (64 MiB / TC, 2 TCs) or unknown: stay conservative.
        return 36 * 1024 * 1024, 13 * 1024 * 1024
    # v5e / v6e: 128 MiB physical VMEM.
    return 64 * 1024 * 1024, 32 * 1024 * 1024


def _choose_block_n(N, C, bpe_in, budget_bytes):
    """Largest batch tile (multiple of 8, dividing N) whose true VMEM high-water
    mark fits the budget; prefers >= 2 tiles so the parallel axis can shard
    across both TensorCores on dual-TC chips."""
    c_pad = -(-C // 128) * 128

    def need(tn):
        bufs = 2 * (2 * tn * c_pad * bpe_in      # expert + ensemble tiles, 2x buffered
                    + tn * 128 * 4)              # int32 targets pad to (tn,128), 2x buffered
        scratch = tn * c_pad * 4                 # ensemble softmax p
        temps = 6 * tn * c_pad * 4               # live f32 temporaries in the body
        return bufs + scratch + temps

    cands = [d for d in (8192, 4096, 2048, 1024, 512, 256, 128, 64, 32, 16, 8)
             if d <= N and N % d == 0]
    two_tile = [d for d in cands if N // d >= 2]
    for group in (two_tile, cands):
        for tn in group:
            if need(tn) <= budget_bytes:
                return tn
    # Nothing fits the budget cleanly: smallest legal multiple-of-8 divisor,
    # else full extent (always a legal block shape).
    return cands[-1] if cands else N


def ride_loss(expert_logits, output_logits, target, m_list, *, s=1.0,
              base_loss_factor=1.0, additional_diversity_factor=-0.2,
              base_diversity_temperature=1.0, block_n=None):
    E, N, C = expert_logits.shape
    tgt = target.astype(jnp.int32).reshape(N, 1)
    sm = (jnp.asarray(m_list, jnp.float32) * float(s)).reshape(1, C)   # s folded in

    vmem_limit, tile_budget = _vmem_plan()
    bpe = max(jnp.dtype(expert_logits.dtype).itemsize,
              jnp.dtype(output_logits.dtype).itemsize)
    if block_n is None or N % block_n != 0:
        block_n = _choose_block_n(N, C, bpe, tile_budget)
    num_tiles = N // block_n

    kernel = functools.partial(
        ride_loss_kernel,
        base_loss_factor=float(base_loss_factor),
        additional_diversity_factor=float(additional_diversity_factor),
        diversity_temperature=float(base_diversity_temperature),
        n_total=float(N),
        num_experts=float(E),
    )

    out = pl.pallas_call(
        kernel,
        out_shape=jax.ShapeDtypeStruct((num_tiles * 8, 128), jnp.float32),
        grid_spec=pltpu.PrefetchScalarGridSpec(
            num_scalar_prefetch=0,
            grid=(num_tiles, E),
            in_specs=[
                pl.BlockSpec((1, block_n, C), lambda t, e: (e, t, 0)),  # expert logits
                pl.BlockSpec((block_n, C), lambda t, e: (t, 0)),        # ensemble logits
                pl.BlockSpec((block_n, 1), lambda t, e: (t, 0)),        # int32 targets
                pl.BlockSpec((1, C), lambda t, e: (0, 0)),              # s * m_list
            ],
            out_specs=pl.BlockSpec((8, 128), lambda t, e: (t, 0)),      # per-tile partial
            scratch_shapes=[pltpu.VMEM((block_n, C), jnp.float32)],     # ensemble softmax
        ),
        compiler_params=pltpu.CompilerParams(
            dimension_semantics=("parallel", "arbitrary"),
            vmem_limit_bytes=vmem_limit,
        ),
    )(expert_logits, output_logits, tgt, sm)

    # Each tile broadcasts its partial sum over its (8,128) output block; pick one
    # representative element per tile and reduce.
    return jnp.sum(out[::8, 0])


def ride_loss_ref(expert_logits, output_logits, target, m_list, *, s=1.0,
                  base_loss_factor=1.0, additional_diversity_factor=-0.2,
                  base_diversity_temperature=1.0):
    """Pure-JAX reference of the same forward (no algebraic rewrites)."""
    E, N, C = expert_logits.shape
    y = jax.nn.one_hot(target, C, dtype=jnp.float32)
    T = base_diversity_temperature
    loss = 0.0
    log_p = jax.nn.log_softmax(output_logits / T, axis=1)
    p = jnp.exp(log_p)
    for e in range(E):
        x = expert_logits[e]
        batch_m = jnp.sum(y * m_list[None, :], axis=-1, keepdims=True)
        final = jnp.where(y > 0.5, x - batch_m * s, x)
        per_sample = -jnp.sum(y * jax.nn.log_sigmoid(final)
                              + (1.0 - y) * jax.nn.log_sigmoid(-final), axis=-1) / C
        loss += base_loss_factor * jnp.mean(per_sample)
        log_q = jax.nn.log_softmax(x / T, axis=1)
        kl = jnp.sum(p * (log_p - log_q)) / N
        loss += additional_diversity_factor * T * T * kl
    return loss


if __name__ == "__main__":
    key = jax.random.PRNGKey(0)
    N, C, E = 8, 16, 3
    k1, k2 = jax.random.split(key, 2)

    expert_logits = jax.random.normal(k1, (E, N, C), dtype=jnp.float32)
    output_logits = jnp.mean(expert_logits, axis=0)        # ensemble logits
    target = jax.random.randint(k2, (N,), 0, C)            # integer class indices

    # Deterministic "parameters" from __init__(cls_num_list=..., max_m=0.5, s=1)
    cls_num_list = np.array([int(100 * (0.8 ** i)) + 1 for i in range(C)], dtype=np.float64)
    m_list = 1.0 / np.sqrt(np.sqrt(cls_num_list))
    m_list = m_list * (0.5 / np.max(m_list))
    m_list = jnp.asarray(m_list, dtype=jnp.float32)

    loss = ride_loss(expert_logits, output_logits, target, m_list)
    loss = jax.block_until_ready(loss)

    ref = ride_loss_ref(expert_logits, output_logits, target, m_list)
    assert jnp.allclose(loss, ref, rtol=1e-5, atol=1e-5), (loss, ref)

    print("KERNEL_OK")
</pallas_src>

<mosaic_0001>
module attributes {stable_mosaic.version = 11 : i64} {
  func.func @ride_loss_kernel(%arg0: i32, %arg1: i32, %arg2: memref<1x8x16xf32, #tpu.memory_space<vmem>>, %arg3: memref<8x16xf32, #tpu.memory_space<vmem>>, %arg4: memref<8x1xi32, #tpu.memory_space<vmem>>, %arg5: memref<1x16xf32, #tpu.memory_space<vmem>>, %arg6: memref<8x128xf32, #tpu.memory_space<vmem>>, %arg7: memref<8x16xf32, #tpu.memory_space<vmem>>) attributes {dimension_semantics = [#tpu.dimension_semantics<parallel>, #tpu.dimension_semantics<arbitrary>], iteration_bounds = array<i64: 1, 3>, scalar_prefetch = 0 : i64, scratch_operands = 1 : i64, tpu.core_type = #tpu.core_type<tc>, window_params = [{transform_indices = @transform_0, window_bounds = array<i64: 1, 8, 16>}, {transform_indices = @transform_1, window_bounds = array<i64: 8, 16>}, {transform_indices = @transform_2, window_bounds = array<i64: 8, 1>}, {pipeline_mode = #tpu.pipeline_mode<synchronous>, transform_indices = @transform_3, window_bounds = array<i64: 1, 16>}, {transform_indices = @transform_4, window_bounds = array<i64: 8, 128>}]} {
    %c0_i32 = arith.constant 0 : i32
    %0 = arith.cmpi eq, %arg1, %c0_i32 : i32
    %1 = arith.extui %0 : i1 to i32
    %c0_i32_0 = arith.constant 0 : i32
    %2 = arith.cmpi ne, %1, %c0_i32_0 : i32
    scf.if %2 {
      %c0_22 = arith.constant 0 : index
      %c0_23 = arith.constant 0 : index
      %53 = vector.load %arg3[%c0_22, %c0_23] : memref<8x16xf32, #tpu.memory_space<vmem>>, vector<8x16xf32>
      %cst_24 = arith.constant dense<0xFF800000> : vector<8xf32>
      %54 = vector.multi_reduction <maximumf>, %53, %cst_24 [1] : vector<8x16xf32> to vector<8xf32>
      %55 = vector.shape_cast %54 : vector<8xf32> to vector<8x1xf32>
      %56 = vector.broadcast %55 : vector<8x1xf32> to vector<8x16xf32>
      %57 = arith.subf %53, %56 : vector<8x16xf32>
      %58 = math.exp %57 : vector<8x16xf32>
      %cst_25 = arith.constant dense<0.000000e+00> : vector<8xf32>
      %59 = vector.multi_reduction <add>, %58, %cst_25 [1] : vector<8x16xf32> to vector<8xf32>
      %60 = vector.shape_cast %59 : vector<8xf32> to vector<8x1xf32>
      %61 = vector.broadcast %60 : vector<8x1xf32> to vector<8x16xf32>
      %62 = arith.divf %58, %61 : vector<8x16xf32>
      %c0_26 = arith.constant 0 : index
      %c0_27 = arith.constant 0 : index
      %63 = vector.load %arg7[%c0_26, %c0_27] : memref<8x16xf32, #tpu.memory_space<vmem>>, vector<8x16xf32>
      tpu.vector_store %arg7[%c0_26, %c0_27], %62 {strides = array<i32>} : memref<8x16xf32, #tpu.memory_space<vmem>>, vector<8x16xf32>,
      %64 = math.log %60 : vector<8x1xf32>
      %65 = vector.broadcast %64 : vector<8x1xf32> to vector<8x16xf32>
      %66 = arith.subf %57, %65 : vector<8x16xf32>
      %67 = arith.mulf %62, %66 : vector<8x16xf32>
      %68 = vector.shape_cast %67 : vector<8x16xf32> to vector<1x8x16xf32>
      %cst_28 = arith.constant dense<0.000000e+00> : vector<1xf32>
      %69 = vector.multi_reduction <add>, %68, %cst_28 [1, 2] : vector<1x8x16xf32> to vector<1xf32>
      %70 = vector.shape_cast %69 : vector<1xf32> to vector<1x1x1xf32>
      %71 = vector.extract %70[0, 0, 0] : f32 from vector<1x1x1xf32>
      %cst_29 = arith.constant -7.500000e-02 : f32
      %72 = arith.mulf %cst_29, %71 : f32
      %73 = vector.broadcast %72 : f32 to vector<8x128xf32>
      %c0_30 = arith.constant 0 : index
      %c0_31 = arith.constant 0 : index
      %74 = vector.load %arg6[%c0_30, %c0_31] : memref<8x128xf32, #tpu.memory_space<vmem>>, vector<8x128xf32>
      tpu.vector_store %arg6[%c0_30, %c0_31], %73 {strides = array<i32>} : memref<8x128xf32, #tpu.memory_space<vmem>>, vector<8x128xf32>,
    } else {
    }
    %c0 = arith.constant 0 : index
    %c0_1 = arith.constant 0 : index
    %c0_2 = arith.constant 0 : index
    %3 = vector.load %arg2[%c0, %c0_1, %c0_2] : memref<1x8x16xf32, #tpu.memory_space<vmem>>, vector<1x8x16xf32>
    %4 = vector.shape_cast %3 : vector<1x8x16xf32> to vector<8x16xf32>
    %c0_3 = arith.constant 0 : index
    %c0_4 = arith.constant 0 : index
    %5 = vector.load %arg4[%c0_3, %c0_4] : memref<8x1xi32, #tpu.memory_space<vmem>>, vector<8x1xi32>
    %6 = tpu.iota {dimensions = array<i32: 1>} : vector<8x16xi32>
    %7 = vector.broadcast %5 : vector<8x1xi32> to vector<8x16xi32>
    %8 = arith.cmpi eq, %6, %7 : vector<8x16xi32>
    %c0_5 = arith.constant 0 : index
    %c0_6 = arith.constant 0 : index
    %9 = vector.load %arg5[%c0_5, %c0_6] : memref<1x16xf32, #tpu.memory_space<vmem>>, vector<1x16xf32>
    %10 = vector.broadcast %9 : vector<1x16xf32> to vector<8x16xf32>
    %11 = arith.subf %4, %10 : vector<8x16xf32>
    %12 = arith.select %8, %11, %4 : vector<8x16xi1>, vector<8x16xf32>
    %cst = arith.constant 0.000000e+00 : f32
    %13 = vector.broadcast %cst : f32 to vector<8x16xf32>
    %14 = arith.minimumf %12, %13 : vector<8x16xf32>
    %15 = math.absf %12 : vector<8x16xf32>
    %cst_7 = arith.constant 0.000000e+00 : f32
    %16 = vector.broadcast %cst_7 : f32 to vector<8x16xf32>
    %17 = arith.subf %16, %15 : vector<8x16xf32>
    %18 = math.exp %17 : vector<8x16xf32>
    %19 = math.log1p %18 : vector<8x16xf32>
    %20 = arith.subf %14, %19 : vector<8x16xf32>
    %cst_8 = arith.constant 0.000000e+00 : f32
    %21 = vector.broadcast %cst_8 : f32 to vector<8x16xf32>
    %22 = arith.select %8, %21, %12 : vector<8x16xi1>, vector<8x16xf32>
    %23 = arith.subf %20, %22 : vector<8x16xf32>
    %cst_9 = arith.constant dense<0xFF800000> : vector<8xf32>
    %24 = vector.multi_reduction <maximumf>, %4, %cst_9 [1] : vector<8x16xf32> to vector<8xf32>
    %25 = vector.shape_cast %24 : vector<8xf32> to vector<8x1xf32>
    %26 = vector.broadcast %25 : vector<8x1xf32> to vector<8x16xf32>
    %27 = arith.subf %4, %26 : vector<8x16xf32>
    %28 = math.exp %27 : vector<8x16xf32>
    %cst_10 = arith.constant dense<0.000000e+00> : vector<8xf32>
    %29 = vector.multi_reduction <add>, %28, %cst_10 [1] : vector<8x16xf32> to vector<8xf32>
    %30 = vector.shape_cast %29 : vector<8xf32> to vector<8x1xf32>
    %31 = math.log %30 : vector<8x1xf32>
    %32 = arith.addf %25, %31 : vector<8x1xf32>
    %c0_11 = arith.constant 0 : index
    %c0_12 = arith.constant 0 : index
    %33 = vector.load %arg7[%c0_11, %c0_12] : memref<8x16xf32, #tpu.memory_space<vmem>>, vector<8x16xf32>
    %cst_13 = arith.constant -7.812500e-03 : f32
    %34 = vector.broadcast %cst_13 : f32 to vector<8x16xf32>
    %35 = arith.mulf %34, %23 : vector<8x16xf32>
    %36 = arith.mulf %33, %4 : vector<8x16xf32>
    %cst_14 = arith.constant -2.500000e-02 : f32
    %37 = vector.broadcast %cst_14 : f32 to vector<8x16xf32>
    %38 = arith.mulf %37, %36 : vector<8x16xf32>
    %39 = arith.subf %35, %38 : vector<8x16xf32>
    %cst_15 = arith.constant dense<0.000000e+00> : vector<8xf32>
    %40 = vector.multi_reduction <add>, %39, %cst_15 [1] : vector<8x16xf32> to vector<8xf32>
    %41 = vector.shape_cast %40 : vector<8xf32> to vector<8x1xf32>
    %cst_16 = arith.constant -2.500000e-02 : f32
    %42 = vector.broadcast %cst_16 : f32 to vector<8x1xf32>
    %43 = arith.mulf %42, %32 : vector<8x1xf32>
    %44 = arith.addf %41, %43 : vector<8x1xf32>
    %c0_17 = arith.constant 0 : index
    %c0_18 = arith.constant 0 : index
    %45 = vector.load %arg6[%c0_17, %c0_18] : memref<8x128xf32, #tpu.memory_space<vmem>>, vector<8x128xf32>
    %46 = vector.shape_cast %44 : vector<8x1xf32> to vector<1x8x1xf32>
    %cst_19 = arith.constant dense<0.000000e+00> : vector<1xf32>
    %47 = vector.multi_reduction <add>, %46, %cst_19 [1, 2] : vector<1x8x1xf32> to vector<1xf32>
    %48 = vector.shape_cast %47 : vector<1xf32> to vector<1x1x1xf32>
    %49 = vector.extract %48[0, 0, 0] : f32 from vector<1x1x1xf32>
    %50 = vector.broadcast %49 : f32 to vector<8x128xf32>
    %51 = arith.addf %45, %50 : vector<8x128xf32>
    %c0_20 = arith.constant 0 : index
    %c0_21 = arith.constant 0 : index
    %52 = vector.load %arg6[%c0_20, %c0_21] : memref<8x128xf32, #tpu.memory_space<vmem>>, vector<8x128xf32>
    tpu.vector_store %arg6[%c0_20, %c0_21], %51 {strides = array<i32>} : memref<8x128xf32, #tpu.memory_space<vmem>>, vector<8x128xf32>,
    return
  }
  func.func @transform_0(%arg0: i32, %arg1: i32) -> (i32, i32, i32) {
    %c0_i32 = arith.constant 0 : i32
    %c0_i32_0 = arith.constant 0 : i32
    return %arg1, %arg0, %c0_i32 : i32, i32, i32
  }
  func.func @transform_1(%arg0: i32, %arg1: i32) -> (i32, i32) {
    %c0_i32 = arith.constant 0 : i32
    %c0_i32_0 = arith.constant 0 : i32
    return %arg0, %c0_i32 : i32, i32
  }
  func.func @transform_2(%arg0: i32, %arg1: i32) -> (i32, i32) {
    %c0_i32 = arith.constant 0 : i32
    %c0_i32_0 = arith.constant 0 : i32
    return %arg0, %c0_i32 : i32, i32
  }
  func.func @transform_3(%arg0: i32, %arg1: i32) -> (i32, i32) {
    %c0_i32 = arith.constant 0 : i32
    %c0_i32_0 = arith.constant 0 : i32
    %c0_i32_1 = arith.constant 0 : i32
    return %c0_i32, %c0_i32_0 : i32, i32
  }
  func.func @transform_4(%arg0: i32, %arg1: i32) -> (i32, i32) {
    %c0_i32 = arith.constant 0 : i32
    %c0_i32_0 = arith.constant 0 : i32
    return %arg0, %c0_i32 : i32, i32
  }
}

</mosaic_0001>

<bundles_post_ra>
// kernel: tpu_custom_call.1
= control target key start
LH: loop header
LB: loop body
LE: loop exit
PB: predicated region body
PF: predicated region fallthrough
CT: control target
= control target key end

     0   :  { %9 = vsyncpa [#allocation4], 0  ;;  %s829_s0 = inlined_call_operand.hbm [shape: f32[3,8,16], index: 0, kind: input, shape index: {}]   ;;  %s830_s1 = inlined_call_operand.vmem [shape: f32[8,16], index: 1, kind: input, shape index: {}]   ;;  %s831_s2 = inlined_call_operand.vmem [shape: s32[8,1], index: 2, kind: input, shape index: {}]   ;;  %s832_s3 = inlined_call_operand.vmem [shape: f32[1,16], index: 3, kind: input, shape index: {}]   ;;  %s833_s4 = inlined_call_operand.hbm [shape: f32[8,128], index: 4, kind: output, shape index: {}]  }
   0x1   :  { %11 = vsyncpa [#allocation4 + $0x1], 0 }
   0x2   :  { %12 = vsyncpa [#allocation5], 0  ;;  %s715_s15 = smov 0   ;;  %s717_s16 = smov 0  }
   0x3   :  { %s719_s17 = smov 0   ;;  %s721_s18 = smov 0  }
   0x4   :  { %s723_s19 = smov 0   ;;  %s725_s20 = smov 0  }
   0x5 LB: > { %s477_s21 = sadd.s32 4294967295, %s686_s20   ;;  %s27_s22 = sadd.s32 1, %s682_s19  ;;  %s686_s20 = sphi %s725_s20, %s18_s20   ;;  %s682_s19 = sphi %s723_s19, %s840_s19   ;;  %s678_s18 = sphi %s721_s18, %s839_s18   ;;  %s674_s17 = sphi %s719_s17, %s838_s17   ;;  %s670_s16 = sphi %s717_s16, %s837_s16   ;;  %s666_s15 = sphi %s715_s15, %s836_s15  }
   0x6   : > { %p28_p0 = scmp.ge.s32.totalorder %s27_s22, 3  ;;  %s39_s23 = sadd.s32 1, %s674_s17 }
   0x7   : > { %p46_p1 = scmp.ne.s32.totalorder %s674_s17, %s670_s16  ;;  %p47_p2 = scmp.eq.s32.totalorder %s686_s20, 0 }
   0x8   : > { %s842_s22 = smov (%p28_p0, %s27_s22), 0  ;;  %p52_p4 = scmp.ne.s32.totalorder %s670_s16, %s666_s15 }
   0x9   : > { %p751_p3 = por %p47_p2, %p46_p1  ;;  %s34_s25 = ssub.s32 %s682_s19, %s842_s22 }
   0xa   : > { %p53_p5 = scmp.eq.s32.totalorder %s477_s21, 0  ;;  %p37_p6 = scmp.eq.s32.totalorder %s34_s25, 0 }
   0xb   : > { %p505_p8 = scmp.lt.s32.totalorder %s686_s20, 3  ;;  %s192_s28 = sand.u32 1, %s674_s17  }
   0xc   : > { %p760_p7 = por %p53_p5, %p52_p4  ;;  %s483_s29 = sshll.u32 %s682_s19, 3 }
   0xd   : > { %s766_s27 = scalar_select %p37_p6, %s674_s17, %s39_s23  }
   0xe   : > { %s482_s30 = sshll.u32 %s192_s28, 3  ;;  %s201_s7 = scalar_lea.hbm %s829_s0, %s483_s29 }
   0xf   : > { %s203_s8 = sshll.u32 %s201_s7, 4  ;;  %s196_s9 = scalar_lea.vmem [#allocation3], %s482_s30  ;;  %s204_s8 = int_to_ptr.hbm [resolvable:$true] %s203_s8 }
  0x10   : > { %s205_s10 = sshll.u32 %s196_s9, 4  ;;  %p502_p9 = pnand %p505_p8, %p751_p3  ;;  %s206_s10 = int_to_ptr.vmem [resolvable:$true] %s205_s10 }
  0x11   : > { %p484_p10 = scmp.ge.s32.totalorder %s686_s20, 1  ;;  %p210_p11 = scmp.lt.s32.totalorder %s686_s20, 4 }
  0x12   : > { %s193_s11 = scalar_lea.sflag [#allocation4], %s192_s28 }
  0x13   : > { %504 = dma.hbm_to_vmem [thread:$0]  (!%p502_p9), %s204_s8, 128, %s206_s10, %s193_s11  }
  0x14   : > { %p211_p12 = pnand %p484_p10, %p210_p11 }
  0x15   : > { %s216_s12 = sand.u32 (!%p211_p12), 1, %s670_s16  }
  0x16   : > { %214 = sbr.rel (%p211_p12) target bundleno = 974 (0x3ce), region = 36  ;;  %s778_s13 = sshll.u32 (!%p211_p12), %s216_s12, 3 }
  0x17   : > { %s217_s14 = scalar_lea.sflag (!%p211_p12), [#allocation4], %s216_s12  ;;  %s220_s15 = scalar_lea.vmem (!%p211_p12), [#allocation3], %s778_s13 }
  0x1b   : > { %657 = dma.done.wait (%p760_p7), %s217_s14, 128  }
  0x1c   : > { %659 = vsyncadd (%p760_p7), %s217_s14, 4294967168  ;;  %p486_p13 = scmp.ne.s32.totalorder %s678_s18, 0 }
  0x1e   : > { %260 = sbr.rel (%p486_p13) target bundleno = 485 (0x1e5), region = 44 }
  0x23   : > { %v261_v0 = vld [vmem:[%s830_s1] sm:$0xff]  ;;  %vm262_vm0 = vcmask 130048  }
  0x24   : > { %v263_v1 = vsel %vm262_vm0, %v261_v0, -inf }
  0x25   : > { %264 = vmax.xlane.f32.xlu0 %v263_v1 }
  0x98   : > { %v265_v2 = vpop.xlane.xlu0 %264 }
  0x99   : > { %v266_v3 = vsub.f32 %v261_v0, %v265_v2 }
  0x9b   : > { %v267_v4 = vmul.f32 1.442695, %v266_v3 }
  0x9d   : > { %558 = vpow2.f32 %v267_v4 }
  0xa3   : > { %v559_v5 = vpop.eup %558 }
  0xa4   : > { %v269_v6 = vsel %vm262_vm0, %v559_v5, 0.0 }
  0xa5   : > { %270 = vadd.xlane.f32.xlu0 %v269_v6 }
 0x118   : > { %v271_v7 = vpop.xlane.xlu0 %270 }
 0x119   : > { %560 = vrcp.f32 %v271_v7  ;;  %v283_v12 = vand.u32 2147483648, %v271_v7  ;;  %v281_v14 = vand.u32 2147483647, %v271_v7  ;;  %vm277_vm2 = vweird.f32 %v271_v7 }
 0x11a   : > { %562 = vlog2.f32 %v271_v7 }
 0x11b   : > { %v284_v17 = vor.u32 1.1754944e-38, %v283_v12  ;;  %vm282_vm4 = vcmp.eq.f32.partialorder %v281_v14, 8.507059e+37 }
 0x11f   : > { %v561_v8 = vpop.eup %560 }
 0x120   : > { %v273_v9 = vmul.f32 %v561_v8, %v271_v7  ;;  %v563_v11 = vpop.eup %562  ;;  %vm278_vm1 = vweird.f32 %v561_v8 }
 0x121   : > { %v289_v16 = vmul.f32 0.6931472, %v563_v11  ;;  %vm279_vm3 = vmor %vm277_vm2, %vm278_vm1 }
 0x122   : > { %v274_v10 = vsub.f32 1.0, %v273_v9 }
 0x123   : > { %v290_v21 = vsub.f32 %v266_v3, %v289_v16 }
 0x124   : > { %v275_v13 = vmul.f32 %v561_v8, %v274_v10 }
 0x126   : > { %v276_v15 = vadd.f32 %v561_v8, %v275_v13 }
 0x128   : > { %v280_v18 = vsel %vm279_vm3, %v561_v8, %v276_v15 }
 0x129   : > { %v285_v19 = vsel %vm282_vm4, %v284_v17, %v280_v18 }
 0x12a   : > { %v286_v20 = vmul.f32 %v559_v5, %v285_v19 }
 0x12c   : > { %v291_v22 = vmul.f32 %v290_v21, %v286_v20  ;;  %287 = vst.msk [vmem:[#allocation2] sm:$0xff] %vm262_vm0, %v286_v20 }
 0x12e   : > { %v292_v23 = vsel %vm262_vm0, %v291_v22, 0.0 }
 0x12f   : > { %293 = vadd.xlane.f32.xlu1 %v292_v23 }
 0x1a2   : > { %v294_v24 = vpop.xlane.xlu1 %293 }
 0x1a3   : > { %v295_v25 = vrot.slane %v294_v24, 4 }
 0x1a5   : > { %v296_v26 = vadd.f32 %v295_v25, %v294_v24 }
 0x1a7   : > { %v297_v27 = vrot.slane %v296_v26, 2 }
 0x1a9   : > { %v298_v28 = vadd.f32 %v297_v27, %v296_v26 }
 0x1ab   : > { %v299_v29 = vrot.slane %v298_v28, 1 }
 0x1ad   : > { %v300_v30 = vadd.f32 %v299_v29, %v298_v28 }
 0x1af   : > { %491 = vpush %v300_v30 }
 0x1e0   : > { %s492_s18 = spop %491 }
 0x1e1   : > { %s302_s25 = smul.f32 -0.075, %s492_s18 }
 0x1e3   : > { %v303_v31 = vstv %s302_s25 }
 0x1e4   : > { %304 = vst [vmem:[#allocation6] sm:$0xff] %v303_v31 }
 0x1e5 PF: > { %v306_v32 = vld [vmem:[%s831_s2] sm:$0xff]  ;;  %v688_v33 = vmov 0   ;;  %v305_v34 = vld [vmem:[%s220_s15] sm:$0xff]  ;;  %vm336_vm5 = vcmask 130048   ;;  %v307_v36 = vlaneseq  ;;  %vm360_vm8 = vcmask 7168   ;;  %s689_s5 = smov [#allocation6]  }
 0x1e6   : > { %564 = vset.pattern.permute.xlu0 %v688_v33  ;;  %v337_v35 = vsel %vm336_vm5, %v305_v34, -inf  ;;  %v565_v37 = vld [vmem:[%s832_s3] ss:$0 sm:$0xff]  ;;  %s382_s6 = sshll.u32 %s689_s5, 4  ;;  %s384_s9 = sshll.u32 %s833_s4, 4  ;;  %s383_s6 = int_to_ptr.vmem [resolvable:$true] %s382_s6  ;;  %s385_s9 = int_to_ptr.hbm [resolvable:$true] %s384_s9 }
 0x1e7   : > { %310 = vperm.xlu0 %564, %v306_v32   ;;  %v308_v38 = vand.u32 127, %v307_v36  ;;  %v317_v39 = vsub.f32 %v305_v34, %v565_v37  ;;  %v349_v59 = vld [vmem:[#allocation2] sm:$0xff]  ;;  %p506_p0 = scmp.eq.s32.totalorder %s477_s21, 2 }
 0x1e8   : > { %v351_v62 = vmul.f32 %v349_v59, %v305_v34 }
 0x1ea   : > { %v352_v2 = vmul.f32 -0.025, %v351_v62 }
 0x1eb   : > { %v359_v20 = vld [vmem:[#allocation6] sm:$0xff] }
 0x211   : > { %338 = vmax.xlane.f32.xlu0 %v337_v35 }
 0x259   : > { %v311_v40 = vpop.permute.xlu0 %310 }
 0x25a   : > { %vm312_vm6 = vcmp.eq.s32.totalorder %v308_v38, %v311_v40 }
 0x25b   : > { %v318_v41 = vsel %vm312_vm6, %v317_v39, %v305_v34  ;;  %v334_v60 = vsel %vm312_vm6, 0.0, %v305_v34 }
 0x25c   : > { %v320_v42 = vand.u32 2147483647, %v318_v41  ;;  %v319_v56 = vmin.f32 %v318_v41, 0.0 }
 0x25e   : > { %v321_v43 = vsub.f32 0.0, %v320_v42 }
 0x260   : > { %v322_v44 = vmul.f32 1.442695, %v321_v43 }
 0x262   : > { %566 = vpow2.f32 %v322_v44 }
 0x268   : > { %v567_v45 = vpop.eup %566 }
 0x269   : > { %v324_v46 = vadd.f32 1.0, %v567_v45  ;;  %v327_v47 = vmul.f32 -0.5, %v567_v45  ;;  %v330_v50 = vand.u32 2147483647, %v567_v45 }
 0x26b   : > { %568 = vlog2.f32 %v324_v46  ;;  %v328_v49 = vadd.f32 1.0, %v327_v47  ;;  %vm331_vm7 = vcmp.lt.f32.partialorder %v330_v50, 0.0004427343 }
 0x26d   : > { %v329_v52 = vmul.f32 %v567_v45, %v328_v49 }
 0x271   : > { %v569_v48 = vpop.eup %568 }
 0x272   : > { %v326_v51 = vmul.f32 0.6931472, %v569_v48 }
 0x274   : > { %v332_v54 = vsel %vm331_vm7, %v329_v52, %v326_v51 }
 0x275   : > { %v333_v58 = vsub.f32 %v319_v56, %v332_v54 }
 0x277   : > { %v335_v61 = vsub.f32 %v333_v58, %v334_v60 }
 0x279   : > { %v350_v0 = vmul.f32 -0.0078125, %v335_v61 }
 0x27b   : > { %v353_v3 = vsub.f32 %v350_v0, %v352_v2 }
 0x27d   : > { %v354_v4 = vsel %vm336_vm5, %v353_v3, 0.0 }
 0x284   : > { %v339_v53 = vpop.xlane.xlu0 %338 }
 0x285   : > { %v340_v55 = vsub.f32 %v305_v34, %v339_v53 }
 0x287   : > { %v341_v57 = vmul.f32 1.442695, %v340_v55 }
 0x289   : > { %570 = vpow2.f32 %v341_v57 }
 0x28f   : > { %v571_v63 = vpop.eup %570 }
 0x290   : > { %v343_v1 = vsel %vm336_vm5, %v571_v63, 0.0 }
 0x291   : > { %344 = vadd.xlane.f32.xlu1 %v343_v1 }
 0x299   : > { %355 = vadd.xlane.f32.xlu1 %v354_v4 }
 0x304   : > { %v345_v5 = vpop.xlane.xlu1 %344 }
 0x305   : > { %572 = vlog2.f32 %v345_v5 }
 0x30b   : > { %v573_v6 = vpop.eup %572 }
 0x30c   : > { %v347_v7 = vmul.f32 0.6931472, %v573_v6  ;;  %v356_v10 = vpop.xlane.xlu1 %355 }
 0x30e   : > { %v348_v8 = vadd.f32 %v347_v7, %v339_v53 }
 0x310   : > { %v357_v9 = vmul.f32 -0.025, %v348_v8 }
 0x312   : > { %v358_v11 = vadd.f32 %v357_v9, %v356_v10 }
 0x314   : > { %v361_v12 = vsel %vm360_vm8, %v358_v11, 0.0 }
 0x315   : > { %362 = vadd.xlane.f32.xlu2 %v361_v12 }
 0x388   : > { %v363_v13 = vpop.xlane.xlu2 %362 }
 0x389   : > { %v364_v14 = vrot.slane %v363_v13, 4 }
 0x38b   : > { %v365_v15 = vadd.f32 %v364_v14, %v363_v13 }
 0x38d   : > { %v366_v16 = vrot.slane %v365_v15, 2 }
 0x38f   : > { %v367_v17 = vadd.f32 %v366_v16, %v365_v15 }
 0x391   : > { %v368_v18 = vrot.slane %v367_v17, 1 }
 0x393   : > { %v369_v19 = vadd.f32 %v368_v18, %v367_v17 }
 0x395   : > { %493 = vpush %v369_v19 }
 0x3c6   : > { %s494_s10 = spop %493 }
 0x3c7   : > { %v371_v21 = vstv %s494_s10 }
 0x3c8   : > { %v372_v22 = vadd.f32 %v371_v21, %v359_v20 }
 0x3ca   : > { %373 = vst [vmem:[#allocation6] sm:$0xff] %v372_v22 }
 0x3cb   : > { %498 = dma.vmem_to_hbm [thread:$0]  (%p506_p0), %s383_s6, 128, %s385_s9, [#allocation5]  }
 0x3cc   : > { %661 = dma.done.wait (%p506_p0), [#allocation5], 128  }
 0x3cd   : > { %663 = vsyncadd (%p506_p0), [#allocation5], 4294967168 }
 0x3ce PF: > { %s18_s20 = sadd.s32 1, %s686_s20   ;;  %s836_s15 = smov %s670_s16 }
 0x3cf   : > { %p15_p1 = scmp.ge.s32.totalorder %s18_s20, 5   ;;  %s837_s16 = smov %s674_s17 }
 0x3d0   : > { %s838_s17 = smov %s766_s27  ;;  %s839_s18 = smov %s682_s19 }
 0x3d1   : > { %s840_s19 = smov %s842_s22  ;;  %17 = sbr.rel (!%p15_p1) target bundleno = 5 (0x5), region = 84 }
 0x3d6   :  { %398 = vsyncpa [#allocation4], 1 }
 0x3d7   :  { %400 = vsyncpa [#allocation4 + $0x1], 1 }
 0x3d8   :  { %401 = vsyncpa [#allocation5], 1 }
 0x3d9   :  { %403 = vsyncpa [#allocation5 + $0x1], 1 }

</bundles_post_ra>
